<compile_context>
chip_gen: v6e
topology: v6e:2x2x1
jax: 0.10.0
libtpu: 0.0.40
codegen_flags: <defaults>
</compile_context>

<pallas_src>
import functools

import jax
import jax.numpy as jnp
from jax.experimental import pallas as pl
from jax.experimental.pallas import tpu as pltpu

LANES = 128
MAX_TILE_ROWS = 2048   # (2048, 128) f32 block = 1 MiB per input


def _masked_soft_l1_kernel(pred_ref, target_ref, mask_ref, out_ref, *, inv_factor):
    i = pl.program_id(1)   # reduction axis

    @pl.when(i == 0)
    def _():
        out_ref[...] = jnp.zeros_like(out_ref)

    p = pred_ref[...].astype(jnp.float32) * mask_ref[...].astype(jnp.float32)
    d = (p - target_ref[...].astype(jnp.float32)) * inv_factor
    ad = jnp.abs(d)
    loss = jnp.where(ad < 1.0, 0.5 * d * d, ad - 0.5)   # SmoothL1, beta=1.0
    # Partial-sum onto the resident (8,128) output block: pure VPU vreg adds,
    # no cross-lane reduction inside the hot loop.
    out_ref[...] += jnp.sum(loss.reshape(-1, 8, LANES), axis=0)


def _round_up(x, m):
    return (x + m - 1) // m * m


@functools.partial(jax.jit, static_argnames=("factor",))
def masked_soft_l1(pred, target, mask, factor=5):
    """Pallas implementation of MaskedSoftL1.forward. Returns a scalar f32."""
    assert pred.shape == target.shape == mask.shape
    n_valid = pred.size                # mean over ALL elements (PyTorch default)

    rows_needed = pl.cdiv(n_valid, LANES)
    tile_rows = min(MAX_TILE_ROWS, _round_up(rows_needed, 8))
    # Use both TensorCores (v7x) when there is enough work; harmless on 1-TC chips.
    num_cores = 2 if rows_needed >= 2 * tile_rows else 1
    rows = _round_up(rows_needed, num_cores * tile_rows)
    steps_per_core = rows // (num_cores * tile_rows)
    pad = rows * LANES - n_valid

    def prep(x):
        xf = x.reshape(-1)
        if pad:
            xf = jnp.pad(xf, (0, pad))   # zero pad -> zero loss contribution
        return xf.reshape(rows, LANES)

    pf, tf, mf = prep(pred), prep(target), prep(mask)

    in_spec = pl.BlockSpec((tile_rows, LANES),
                           lambda c, i: (c * steps_per_core + i, 0))
    out_spec = pl.BlockSpec((8, LANES), lambda c, i: (c, 0))

    kernel = functools.partial(_masked_soft_l1_kernel,
                               inv_factor=1.0 / float(factor))

    partial_sums = pl.pallas_call(
        kernel,
        out_shape=jax.ShapeDtypeStruct((num_cores * 8, LANES), jnp.float32),
        grid_spec=pltpu.PrefetchScalarGridSpec(
            num_scalar_prefetch=0,
            grid=(num_cores, steps_per_core),
            in_specs=[in_spec, in_spec, in_spec],
            out_specs=out_spec,
        ),
        compiler_params=pltpu.CompilerParams(
            dimension_semantics=("parallel", "arbitrary")),
    )(pf, tf, mf)

    # Single cheap cross-lane reduction + mean, outside the kernel.
    return jnp.sum(partial_sums) / jnp.float32(n_valid)


def _reference(pred, target, mask, factor=5):
    p = (pred.astype(jnp.float32) * mask.astype(jnp.float32)) / factor
    t = target.astype(jnp.float32) / factor
    d = p - t
    ad = jnp.abs(d)
    loss = jnp.where(ad < 1.0, 0.5 * d * d, ad - 0.5)
    return jnp.mean(loss)


def _check(shape, key, factor=5):
    k1, k2, k3 = jax.random.split(key, 3)
    pred = jax.random.normal(k1, shape, dtype=jnp.float32) * 3.0
    target = jax.random.normal(k2, shape, dtype=jnp.float32) * 3.0
    mask = (jax.random.uniform(k3, shape) > 0.5).astype(jnp.float32)

    out = jax.block_until_ready(masked_soft_l1(pred, target, mask, factor=factor))
    ref = _reference(pred, target, mask, factor=factor)
    assert jnp.allclose(out, ref, rtol=1e-5, atol=1e-5), (shape, out, ref)


if __name__ == "__main__":
    key = jax.random.PRNGKey(0)
    k0, k1, k2 = jax.random.split(key, 3)

    # Primary: NCHW conv-style input, matches the module's typical use.
    _check((2, 4, 16, 16), k0, factor=5)
    # Ragged size (exercises the in-wrapper zero-padded tail).
    _check((2, 3, 15, 17), k1, factor=5)
    # Larger: exercises the multi-step reduction and the 2-core parallel split.
    _check((8, 8, 128, 128), k2, factor=5)

    print("KERNEL_OK")
</pallas_src>

<mosaic_0001>
module attributes {stable_mosaic.version = 11 : i64} {
  func.func @_masked_soft_l1_kernel(%arg0: i32, %arg1: i32, %arg2: memref<16x128xf32, #tpu.memory_space<vmem>>, %arg3: memref<16x128xf32, #tpu.memory_space<vmem>>, %arg4: memref<16x128xf32, #tpu.memory_space<vmem>>, %arg5: memref<8x128xf32, #tpu.memory_space<vmem>>) attributes {dimension_semantics = [#tpu.dimension_semantics<parallel>, #tpu.dimension_semantics<arbitrary>], iteration_bounds = array<i64: 1, 1>, scalar_prefetch = 0 : i64, scratch_operands = 0 : i64, tpu.core_type = #tpu.core_type<tc>, window_params = [{transform_indices = @transform_0, window_bounds = array<i64: 16, 128>}, {transform_indices = @transform_1, window_bounds = array<i64: 16, 128>}, {transform_indices = @transform_2, window_bounds = array<i64: 16, 128>}, {transform_indices = @transform_3, window_bounds = array<i64: 8, 128>}]} {
    %c0_i32 = arith.constant 0 : i32
    %0 = arith.cmpi eq, %arg1, %c0_i32 : i32
    %1 = arith.extui %0 : i1 to i32
    %c0_i32_0 = arith.constant 0 : i32
    %2 = arith.cmpi ne, %1, %c0_i32_0 : i32
    scf.if %2 {
      %cst_14 = arith.constant 0.000000e+00 : f32
      %24 = vector.broadcast %cst_14 : f32 to vector<8x128xf32>
      %c0_15 = arith.constant 0 : index
      %c0_16 = arith.constant 0 : index
      %25 = vector.load %arg5[%c0_15, %c0_16] : memref<8x128xf32, #tpu.memory_space<vmem>>, vector<8x128xf32>
      tpu.vector_store %arg5[%c0_15, %c0_16], %24 {strides = array<i32>} : memref<8x128xf32, #tpu.memory_space<vmem>>, vector<8x128xf32>,
    } else {
    }
    %c0 = arith.constant 0 : index
    %c0_1 = arith.constant 0 : index
    %3 = vector.load %arg2[%c0, %c0_1] : memref<16x128xf32, #tpu.memory_space<vmem>>, vector<16x128xf32>
    %c0_2 = arith.constant 0 : index
    %c0_3 = arith.constant 0 : index
    %4 = vector.load %arg4[%c0_2, %c0_3] : memref<16x128xf32, #tpu.memory_space<vmem>>, vector<16x128xf32>
    %5 = arith.mulf %3, %4 : vector<16x128xf32>
    %c0_4 = arith.constant 0 : index
    %c0_5 = arith.constant 0 : index
    %6 = vector.load %arg3[%c0_4, %c0_5] : memref<16x128xf32, #tpu.memory_space<vmem>>, vector<16x128xf32>
    %7 = arith.subf %5, %6 : vector<16x128xf32>
    %cst = arith.constant 2.000000e-01 : f32
    %8 = vector.broadcast %cst : f32 to vector<16x128xf32>
    %9 = arith.mulf %7, %8 : vector<16x128xf32>
    %10 = math.absf %9 : vector<16x128xf32>
    %cst_6 = arith.constant 1.000000e+00 : f32
    %11 = vector.broadcast %cst_6 : f32 to vector<16x128xf32>
    %12 = arith.cmpf olt, %10, %11 : vector<16x128xf32>
    %cst_7 = arith.constant 5.000000e-01 : f32
    %13 = vector.broadcast %cst_7 : f32 to vector<16x128xf32>
    %14 = arith.mulf %13, %9 : vector<16x128xf32>
    %15 = arith.mulf %14, %9 : vector<16x128xf32>
    %cst_8 = arith.constant 5.000000e-01 : f32
    %16 = vector.broadcast %cst_8 : f32 to vector<16x128xf32>
    %17 = arith.subf %10, %16 : vector<16x128xf32>
    %18 = arith.select %12, %15, %17 : vector<16x128xi1>, vector<16x128xf32>
    %c0_9 = arith.constant 0 : index
    %c0_10 = arith.constant 0 : index
    %19 = vector.load %arg5[%c0_9, %c0_10] : memref<8x128xf32, #tpu.memory_space<vmem>>, vector<8x128xf32>
    %20 = vector.shape_cast %18 : vector<16x128xf32> to vector<2x8x128xf32>
    %cst_11 = arith.constant dense<0.000000e+00> : vector<8x128xf32>
    %21 = vector.multi_reduction <add>, %20, %cst_11 [0] : vector<2x8x128xf32> to vector<8x128xf32>
    %22 = arith.addf %19, %21 : vector<8x128xf32>
    %c0_12 = arith.constant 0 : index
    %c0_13 = arith.constant 0 : index
    %23 = vector.load %arg5[%c0_12, %c0_13] : memref<8x128xf32, #tpu.memory_space<vmem>>, vector<8x128xf32>
    tpu.vector_store %arg5[%c0_12, %c0_13], %22 {strides = array<i32>} : memref<8x128xf32, #tpu.memory_space<vmem>>, vector<8x128xf32>,
    return
  }
  func.func @transform_0(%arg0: i32, %arg1: i32) -> (i32, i32) {
    %c1_i32 = arith.constant 1 : i32
    %0 = arith.muli %arg0, %c1_i32 : i32
    %1 = arith.addi %0, %arg1 : i32
    %c0_i32 = arith.constant 0 : i32
    %c0_i32_0 = arith.constant 0 : i32
    return %1, %c0_i32 : i32, i32
  }
  func.func @transform_1(%arg0: i32, %arg1: i32) -> (i32, i32) {
    %c1_i32 = arith.constant 1 : i32
    %0 = arith.muli %arg0, %c1_i32 : i32
    %1 = arith.addi %0, %arg1 : i32
    %c0_i32 = arith.constant 0 : i32
    %c0_i32_0 = arith.constant 0 : i32
    return %1, %c0_i32 : i32, i32
  }
  func.func @transform_2(%arg0: i32, %arg1: i32) -> (i32, i32) {
    %c1_i32 = arith.constant 1 : i32
    %0 = arith.muli %arg0, %c1_i32 : i32
    %1 = arith.addi %0, %arg1 : i32
    %c0_i32 = arith.constant 0 : i32
    %c0_i32_0 = arith.constant 0 : i32
    return %1, %c0_i32 : i32, i32
  }
  func.func @transform_3(%arg0: i32, %arg1: i32) -> (i32, i32) {
    %c0_i32 = arith.constant 0 : i32
    %c0_i32_0 = arith.constant 0 : i32
    return %arg0, %c0_i32 : i32, i32
  }
}

</mosaic_0001>

<bundles_post_ra>
// kernel: masked_soft_l1.1
= control target key start
LH: loop header
LB: loop body
LE: loop exit
PB: predicated region body
PF: predicated region fallthrough
CT: control target
= control target key end

     0   :  { %s179_s0 = inlined_call_operand.vmem [shape: f32[16,128], index: 0, kind: input, shape index: {}]   ;;  %s180_s1 = inlined_call_operand.vmem [shape: f32[16,128], index: 1, kind: input, shape index: {}]   ;;  %s181_s2 = inlined_call_operand.vmem [shape: f32[16,128], index: 2, kind: input, shape index: {}]   ;;  %s182_s3 = inlined_call_operand.vmem [shape: f32[8,128], index: 3, kind: output, shape index: {}]  }
   0x1   :  { %v85_v0 = vld [vmem:[%s179_s0] sm:$0xff]  ;;  %v86_v1 = vld [vmem:[%s179_s0 + $0x8] sm:$0xff] }
   0x2   :  { %v87_v2 = vld [vmem:[%s181_s2] sm:$0xff]  ;;  %v88_v3 = vld [vmem:[%s181_s2 + $0x8] sm:$0xff] }
   0x3   :  { %v89_v4 = vmul.f32 %v87_v2, %v85_v0  ;;  %v91_v5 = vld [vmem:[%s180_s1] sm:$0xff]  ;;  %v92_v6 = vld [vmem:[%s180_s1 + $0x8] sm:$0xff]  ;;  %v90_v7 = vmul.f32 %v88_v3, %v86_v1 }
   0x5   :  { %v93_v8 = vsub.f32 %v89_v4, %v91_v5  ;;  %v94_v9 = vsub.f32 %v90_v7, %v92_v6 }
   0x7   :  { %v95_v10 = vmul.f32 0.2, %v93_v8  ;;  %v96_v11 = vmul.f32 0.2, %v94_v9 }
   0x9   :  { %v97_v12 = vand.u32 2147483647, %v95_v10  ;;  %v101_v13 = vmul.f32 0.5, %v95_v10  ;;  %v98_v14 = vand.u32 2147483647, %v96_v11  ;;  %v102_v15 = vmul.f32 0.5, %v96_v11 }
   0xb   :  { %vm99_vm0 = vcmp.lt.f32.partialorder %v97_v12, 1.0  ;;  %v103_v16 = vmul.f32 %v101_v13, %v95_v10  ;;  %v135_v17 = vadd.f32 -0.5, %v97_v12  ;;  %vm100_vm1 = vcmp.lt.f32.partialorder %v98_v14, 1.0 }
   0xc   :  { %v104_v18 = vmul.f32 %v102_v15, %v96_v11  ;;  %v136_v19 = vadd.f32 -0.5, %v98_v14 }
   0xd   :  { %v107_v20 = vsel %vm99_vm0, %v103_v16, %v135_v17 }
   0xe   :  { %v108_v21 = vsel %vm100_vm1, %v104_v18, %v136_v19 }
   0xf   :  { %v110_v22 = vadd.f32 %v108_v21, %v107_v20 }
  0x11   :  { %112 = vst [vmem:[%s182_s3] sm:$0xff] %v110_v22 }

</bundles_post_ra>
